<compile_context>
chip_gen: v5e
topology: v5e:2x2
jax: 0.10.0
libtpu: 0.0.40
codegen_flags: <defaults>
</compile_context>

<pallas_src>
import jax
import jax.numpy as jnp
from jax import lax
from jax.experimental import pallas as pl
from jax.experimental.pallas import tpu as pltpu

_NEG_BIG = -1e30  # finite "-inf" so padded / garbage lanes never create NaNs


def _round_up(x, m):
    return ((x + m - 1) // m) * m


def _make_fused_kernel(n_valid, tile_n, approx_reciprocal):
    needs_mask = (n_valid % tile_n) != 0

    def kernel(x_ref, w1_ref, b1_ref, w2_ref, out_ref, logits_vmem, m_ref, l_ref):
        p = pl.program_id(0)   # 0 = logits + online stats, 1 = normalize/write
        i = pl.program_id(1)   # node-tile index

        @pl.when(jnp.logical_and(p == 0, i == 0))
        def _init():
            m_ref[...] = jnp.full(m_ref.shape, _NEG_BIG, m_ref.dtype)
            l_ref[...] = jnp.zeros(l_ref.shape, l_ref.dtype)

        @pl.when(p == 0)
        def _logits_and_stats():
            # layer1 on the MXU: (E, F) x (tile, F) contracted over F -> (E, tile).
            # Node axis stays on lanes; the (tile,F)->(F,tile) relayout happens on
            # the otherwise-idle XLU inside this memory-bound kernel.
            h = lax.dot_general(
                w1_ref[...], x_ref[...],
                dimension_numbers=(((1,), (1,)), ((), ())),
                preferred_element_type=jnp.float32)
            h = jnp.maximum(h + b1_ref[...], 0.0)                       # bias + ReLU

            # layer2 (E -> 1): VPU multiply + sublane reduce -> lane-dense (1, tile).
            logits = jnp.sum(h * w2_ref[...], axis=0, keepdims=True)

            if needs_mask:
                # Last tile is partial: out-of-range lanes hold garbage -> mask.
                col = i * tile_n + lax.broadcasted_iota(jnp.int32, (1, tile_n), 1)
                logits = jnp.where(col < n_valid, logits, _NEG_BIG)

            logits_vmem[pl.ds(i, 1), :] = logits                         # keep in VMEM

            # Online softmax statistics (running max m, running sum-exp l).
            t_max = jnp.max(logits, axis=-1, keepdims=True)
            m_new = jnp.maximum(m_ref[...], t_max)
            l_ref[...] = (l_ref[...] * jnp.exp(m_ref[...] - m_new)
                          + jnp.sum(jnp.exp(logits - m_new), axis=-1, keepdims=True))
            m_ref[...] = m_new

        @pl.when(p == 1)
        def _normalize():
            lg = logits_vmem[pl.ds(i, 1), :]
            inv_l = pl.reciprocal(l_ref[...], approx=approx_reciprocal)
            out_ref[...] = jnp.exp(lg - m_ref[...]) * inv_l

    return kernel


def select_node2_forward(emb_node, w1, b1, w2, b2=None, *,
                         tile_n=8192, approx_reciprocal=False):
    """Forward pass of Select_node2_model.

    emb_node : (N, F) float32 node embeddings (natural PyTorch layout, read as-is)
    w1 : (E, F) layer1.weight (torch layout);  b1 : (E,) layer1.bias
    w2 : (1, E) or (E,) layer2.weight
    b2 : ignored -- a uniform logit shift cancels under softmax
    returns (1, N) float32 softmax probabilities over nodes.
    """
    del b2
    n, f = emb_node.shape
    e = w1.shape[0]
    assert w1.shape == (e, f)

    tile = _round_up(min(int(tile_n), _round_up(n, 128)), 128)
    num_tiles = pl.cdiv(n, tile)

    w1_c = jnp.asarray(w1, jnp.float32)                 # (E, F), resident
    b1_c = jnp.asarray(b1, jnp.float32).reshape(e, 1)   # (E, 1), resident
    w2_c = jnp.asarray(w2, jnp.float32).reshape(e, 1)   # (E, 1), resident

    # VMEM budget (v7x: 64 MiB physical / 32 MiB scoped default -> cap at 28 MiB).
    lane, sub = 128, 8
    f_pad = _round_up(f, lane)          # (tile, F) buffers are lane-padded to 128
    e_pad = _round_up(e, sub)
    vmem_needed = (2 * tile * f_pad * 4        # x double buffer (lane-padded F)
                   + 3 * e_pad * tile * 4      # (E, tile) intermediates
                   + num_tiles * tile * 4      # resident logits scratch
                   + 2 * sub * tile * 4        # probs out double buffer
                   + (2 << 20))                # weights + Mosaic internal scratch
    vmem_limit = int(min(max(vmem_needed, 8 << 20), 28 << 20))
    # TODO(synk): for very large N (logits scratch > ~16 MiB) switch phase 1 to
    # recompute logits from x instead of caching them in VMEM.

    probs = pl.pallas_call(
        _make_fused_kernel(n, tile, approx_reciprocal),
        out_shape=jax.ShapeDtypeStruct((1, n), jnp.float32),
        grid_spec=pltpu.PrefetchScalarGridSpec(
            num_scalar_prefetch=0,
            grid=(2, num_tiles),                       # (phase, node tile)
            in_specs=[
                # Natural contiguous (tile, F) HBM reads; during phase 1 the last
                # block stays resident (index frozen -> no refetch).
                pl.BlockSpec((tile, f),
                             lambda p, i: (i * (1 - p) + (num_tiles - 1) * p, 0)),
                pl.BlockSpec((e, f), lambda p, i: (0, 0)),   # w1 (resident)
                pl.BlockSpec((e, 1), lambda p, i: (0, 0)),   # b1 (resident)
                pl.BlockSpec((e, 1), lambda p, i: (0, 0)),   # w2 (resident)
            ],
            # Block index pinned to 0 during phase 0 (never written back), walks
            # the tiles during phase 1 when the probs are written.
            out_specs=pl.BlockSpec((1, tile), lambda p, i: (0, i * p)),
            scratch_shapes=[
                pltpu.VMEM((num_tiles, tile), jnp.float32),  # cached logits
                pltpu.VMEM((1, 1), jnp.float32),             # running max m
                pltpu.VMEM((1, 1), jnp.float32),             # running sum-exp l
            ],
        ),
        compiler_params=pltpu.CompilerParams(
            # TODO(synk): v7x megacore -- split the node axis across the two
            # TensorCores with per-core partial (m, l) combined in phase 1.
            dimension_semantics=("arbitrary", "arbitrary"),
            vmem_limit_bytes=vmem_limit,
        ),
    )(emb_node, w1_c, b1_c, w2_c)

    return probs


def init_params(key, node_in_features, emb_size):
    """Mirrors torch.nn.Linear default init, torch-style weight layouts."""
    k1, k2, k3, k4 = jax.random.split(key, 4)
    lim1 = 1.0 / float(node_in_features) ** 0.5
    lim2 = 1.0 / float(emb_size) ** 0.5
    w1 = jax.random.uniform(k1, (emb_size, node_in_features), jnp.float32, -lim1, lim1)
    b1 = jax.random.uniform(k2, (emb_size,), jnp.float32, -lim1, lim1)
    w2 = jax.random.uniform(k3, (1, emb_size), jnp.float32, -lim2, lim2)
    b2 = jax.random.uniform(k4, (1,), jnp.float32, -lim2, lim2)
    # layer3 exists in __init__ but is unused in forward; omitted on purpose.
    return w1, b1, w2, b2


def _reference(emb_node, w1, b1, w2, b2):
    """Plain-JAX reference of the module's math (includes b2; it cancels)."""
    h = jnp.dot(emb_node, jnp.transpose(w1),
                preferred_element_type=jnp.float32,
                precision=jax.lax.Precision.HIGHEST)
    h = jnp.maximum(h + b1[None, :], 0.0)
    logits = jnp.dot(h, jnp.reshape(jnp.asarray(w2, jnp.float32), (-1, 1)),
                     preferred_element_type=jnp.float32,
                     precision=jax.lax.Precision.HIGHEST) + jnp.reshape(b2, (1, 1))
    return jax.nn.softmax(logits.reshape(1, -1), axis=-1)


if __name__ == "__main__":
    node_in_features = 16
    emb_size = 32

    key = jax.random.PRNGKey(0)
    k_x1, k_x2, k_x3, k_p = jax.random.split(key, 4)
    w1, b1, w2, b2 = init_params(k_p, node_in_features, emb_size)

    # --- Test 1: tiny graph, single partial block (block wider than the array).
    n1 = 8
    x1 = jax.random.normal(k_x1, (n1, node_in_features), jnp.float32)
    p1 = jax.block_until_ready(select_node2_forward(x1, w1, b1, w2, b2))
    r1 = _reference(x1, w1, b1, w2, b2)
    assert p1.shape == (1, n1)
    assert jnp.allclose(jnp.sum(p1), 1.0, atol=1e-4)
    assert jnp.allclose(p1, r1, atol=1e-3)

    # --- Test 2: multi-tile grid with a partial last tile (N=300, tile=128);
    #             exercises the online max / sum-exp accumulation and masking.
    n2 = 300
    x2 = jax.random.normal(k_x2, (n2, node_in_features), jnp.float32)
    p2 = jax.block_until_ready(select_node2_forward(x2, w1, b1, w2, b2, tile_n=128))
    r2 = _reference(x2, w1, b1, w2, b2)
    assert p2.shape == (1, n2)
    assert jnp.allclose(jnp.sum(p2), 1.0, atol=1e-4)
    assert jnp.allclose(p2, r2, atol=1e-3)

    # --- Test 3: exact-multiple N (no masking path) across several tiles.
    n3 = 1024
    x3 = jax.random.normal(k_x3, (n3, node_in_features), jnp.float32)
    p3 = jax.block_until_ready(select_node2_forward(x3, w1, b1, w2, b2, tile_n=512))
    r3 = _reference(x3, w1, b1, w2, b2)
    assert p3.shape == (1, n3)
    assert jnp.allclose(jnp.sum(p3), 1.0, atol=1e-4)
    assert jnp.allclose(p3, r3, atol=1e-3)

    print("KERNEL_OK")
</pallas_src>

<mosaic_0001>
module attributes {stable_mosaic.version = 11 : i64} {
  func.func @kernel(%arg0: i32, %arg1: i32, %arg2: memref<128x16xf32, #tpu.memory_space<vmem>>, %arg3: memref<32x16xf32, #tpu.memory_space<vmem>>, %arg4: memref<32x1xf32, #tpu.memory_space<vmem>>, %arg5: memref<32x1xf32, #tpu.memory_space<vmem>>, %arg6: memref<1x128xf32, #tpu.memory_space<vmem>>, %arg7: memref<1x128xf32, #tpu.memory_space<vmem>>, %arg8: memref<1x1xf32, #tpu.memory_space<vmem>>, %arg9: memref<1x1xf32, #tpu.memory_space<vmem>>) attributes {dimension_semantics = [#tpu.dimension_semantics<arbitrary>, #tpu.dimension_semantics<arbitrary>], iteration_bounds = array<i64: 2, 1>, scalar_prefetch = 0 : i64, scratch_operands = 3 : i64, tpu.core_type = #tpu.core_type<tc>, window_params = [{transform_indices = @transform_0, window_bounds = array<i64: 128, 16>}, {pipeline_mode = #tpu.pipeline_mode<synchronous>, transform_indices = @transform_1, window_bounds = array<i64: 32, 16>}, {pipeline_mode = #tpu.pipeline_mode<synchronous>, transform_indices = @transform_2, window_bounds = array<i64: 32, 1>}, {pipeline_mode = #tpu.pipeline_mode<synchronous>, transform_indices = @transform_3, window_bounds = array<i64: 32, 1>}, {transform_indices = @transform_4, window_bounds = array<i64: 1, 128>}]} {
    %c0_i32 = arith.constant 0 : i32
    %0 = arith.cmpi eq, %arg0, %c0_i32 : i32
    %c0_i32_0 = arith.constant 0 : i32
    %1 = arith.cmpi eq, %arg1, %c0_i32_0 : i32
    %2 = arith.andi %0, %1 : i1
    %3 = arith.extui %2 : i1 to i32
    %c0_i32_1 = arith.constant 0 : i32
    %4 = arith.cmpi ne, %3, %c0_i32_1 : i32
    scf.if %4 {
      %cst = arith.constant -1.000000e+30 : f32
      %11 = vector.broadcast %cst : f32 to vector<1x1xf32>
      %c0 = arith.constant 0 : index
      %c0_5 = arith.constant 0 : index
      %12 = vector.load %arg8[%c0, %c0_5] : memref<1x1xf32, #tpu.memory_space<vmem>>, vector<1x1xf32>
      tpu.vector_store %arg8[%c0, %c0_5], %11 {strides = array<i32>} : memref<1x1xf32, #tpu.memory_space<vmem>>, vector<1x1xf32>,
      %cst_6 = arith.constant 0.000000e+00 : f32
      %13 = vector.broadcast %cst_6 : f32 to vector<1x1xf32>
      %c0_7 = arith.constant 0 : index
      %c0_8 = arith.constant 0 : index
      %14 = vector.load %arg9[%c0_7, %c0_8] : memref<1x1xf32, #tpu.memory_space<vmem>>, vector<1x1xf32>
      tpu.vector_store %arg9[%c0_7, %c0_8], %13 {strides = array<i32>} : memref<1x1xf32, #tpu.memory_space<vmem>>, vector<1x1xf32>,
    } else {
    }
    %c0_i32_2 = arith.constant 0 : i32
    %5 = arith.cmpi eq, %arg0, %c0_i32_2 : i32
    %6 = arith.extui %5 : i1 to i32
    %c0_i32_3 = arith.constant 0 : i32
    %7 = arith.cmpi ne, %6, %c0_i32_3 : i32
    scf.if %7 {
      %c0 = arith.constant 0 : index
      %c0_5 = arith.constant 0 : index
      %11 = vector.load %arg3[%c0, %c0_5] : memref<32x16xf32, #tpu.memory_space<vmem>>, vector<32x16xf32>
      %c0_6 = arith.constant 0 : index
      %c0_7 = arith.constant 0 : index
      %12 = vector.load %arg2[%c0_6, %c0_7] : memref<128x16xf32, #tpu.memory_space<vmem>>, vector<128x16xf32>
      %cst = arith.constant dense<0.000000e+00> : vector<32x128xf32>
      %13 = tpu.matmul %11, %12, %cst {dimension_numbers = #tpu.dot_dimension_numbers<[1], [1], [0], [0], [0, 0, 1, 0], [], []>} : vector<32x16xf32>, vector<128x16xf32>, vector<32x128xf32> -> vector<32x128xf32>
      %c0_8 = arith.constant 0 : index
      %c0_9 = arith.constant 0 : index
      %14 = vector.load %arg4[%c0_8, %c0_9] : memref<32x1xf32, #tpu.memory_space<vmem>>, vector<32x1xf32>
      %15 = vector.broadcast %14 : vector<32x1xf32> to vector<32x128xf32>
      %16 = arith.addf %13, %15 : vector<32x128xf32>
      %cst_10 = arith.constant 0.000000e+00 : f32
      %17 = vector.broadcast %cst_10 : f32 to vector<32x128xf32>
      %18 = arith.maximumf %16, %17 : vector<32x128xf32>
      %c0_11 = arith.constant 0 : index
      %c0_12 = arith.constant 0 : index
      %19 = vector.load %arg5[%c0_11, %c0_12] : memref<32x1xf32, #tpu.memory_space<vmem>>, vector<32x1xf32>
      %20 = vector.broadcast %19 : vector<32x1xf32> to vector<32x128xf32>
      %21 = arith.mulf %18, %20 : vector<32x128xf32>
      %cst_13 = arith.constant dense<0.000000e+00> : vector<128xf32>
      %22 = vector.multi_reduction <add>, %21, %cst_13 [0] : vector<32x128xf32> to vector<128xf32>
      %23 = vector.shape_cast %22 : vector<128xf32> to vector<1x128xf32>
      %c128_i32 = arith.constant 128 : i32
      %24 = arith.muli %arg1, %c128_i32 : i32
      %25 = tpu.iota {dimensions = array<i32: 1>} : vector<1x128xi32>
      %26 = vector.broadcast %24 : i32 to vector<1x128xi32>
      %27 = arith.addi %26, %25 : vector<1x128xi32>
      %c8_i32 = arith.constant 8 : i32
      %28 = vector.broadcast %c8_i32 : i32 to vector<1x128xi32>
      %29 = arith.cmpi slt, %27, %28 : vector<1x128xi32>
      %cst_14 = arith.constant -1.000000e+30 : f32
      %30 = vector.broadcast %cst_14 : f32 to vector<1x128xf32>
      %31 = arith.select %29, %23, %30 : vector<1x128xi1>, vector<1x128xf32>
      %32 = arith.index_cast %arg1 : i32 to index
      %c0_15 = arith.constant 0 : index
      %33 = vector.load %arg7[%32, %c0_15] : memref<1x128xf32, #tpu.memory_space<vmem>>, vector<1x128xf32>
      tpu.vector_store %arg7[%32, %c0_15], %31 {strides = array<i32>} : memref<1x128xf32, #tpu.memory_space<vmem>>, vector<1x128xf32>,
      %cst_16 = arith.constant dense<0xFF800000> : vector<1xf32>
      %34 = vector.multi_reduction <maximumf>, %31, %cst_16 [1] : vector<1x128xf32> to vector<1xf32>
      %35 = vector.shape_cast %34 : vector<1xf32> to vector<1x1xf32>
      %c0_17 = arith.constant 0 : index
      %c0_18 = arith.constant 0 : index
      %36 = vector.load %arg8[%c0_17, %c0_18] : memref<1x1xf32, #tpu.memory_space<vmem>>, vector<1x1xf32>
      %37 = arith.maximumf %36, %35 : vector<1x1xf32>
      %c0_19 = arith.constant 0 : index
      %c0_20 = arith.constant 0 : index
      %38 = vector.load %arg9[%c0_19, %c0_20] : memref<1x1xf32, #tpu.memory_space<vmem>>, vector<1x1xf32>
      %c0_21 = arith.constant 0 : index
      %c0_22 = arith.constant 0 : index
      %39 = vector.load %arg8[%c0_21, %c0_22] : memref<1x1xf32, #tpu.memory_space<vmem>>, vector<1x1xf32>
      %40 = arith.subf %39, %37 : vector<1x1xf32>
      %41 = math.exp %40 : vector<1x1xf32>
      %42 = arith.mulf %38, %41 : vector<1x1xf32>
      %43 = vector.broadcast %37 : vector<1x1xf32> to vector<1x128xf32>
      %44 = arith.subf %31, %43 : vector<1x128xf32>
      %45 = math.exp %44 : vector<1x128xf32>
      %cst_23 = arith.constant dense<0.000000e+00> : vector<1xf32>
      %46 = vector.multi_reduction <add>, %45, %cst_23 [1] : vector<1x128xf32> to vector<1xf32>
      %47 = vector.shape_cast %46 : vector<1xf32> to vector<1x1xf32>
      %48 = arith.addf %42, %47 : vector<1x1xf32>
      %c0_24 = arith.constant 0 : index
      %c0_25 = arith.constant 0 : index
      %49 = vector.load %arg9[%c0_24, %c0_25] : memref<1x1xf32, #tpu.memory_space<vmem>>, vector<1x1xf32>
      tpu.vector_store %arg9[%c0_24, %c0_25], %48 {strides = array<i32>} : memref<1x1xf32, #tpu.memory_space<vmem>>, vector<1x1xf32>,
      %c0_26 = arith.constant 0 : index
      %c0_27 = arith.constant 0 : index
      %50 = vector.load %arg8[%c0_26, %c0_27] : memref<1x1xf32, #tpu.memory_space<vmem>>, vector<1x1xf32>
      tpu.vector_store %arg8[%c0_26, %c0_27], %37 {strides = array<i32>} : memref<1x1xf32, #tpu.memory_space<vmem>>, vector<1x1xf32>,
    } else {
    }
    %c1_i32 = arith.constant 1 : i32
    %8 = arith.cmpi eq, %arg0, %c1_i32 : i32
    %9 = arith.extui %8 : i1 to i32
    %c0_i32_4 = arith.constant 0 : i32
    %10 = arith.cmpi ne, %9, %c0_i32_4 : i32
    scf.if %10 {
      %11 = arith.index_cast %arg1 : i32 to index
      %c0 = arith.constant 0 : index
      %12 = vector.load %arg7[%11, %c0] : memref<1x128xf32, #tpu.memory_space<vmem>>, vector<1x128xf32>
      %c0_5 = arith.constant 0 : index
      %c0_6 = arith.constant 0 : index
      %13 = vector.load %arg9[%c0_5, %c0_6] : memref<1x1xf32, #tpu.memory_space<vmem>>, vector<1x1xf32>
      %14 = tpu.reciprocal %13 : vector<1x1xf32> -> vector<1x1xf32>
      %c0_7 = arith.constant 0 : index
      %c0_8 = arith.constant 0 : index
      %15 = vector.load %arg8[%c0_7, %c0_8] : memref<1x1xf32, #tpu.memory_space<vmem>>, vector<1x1xf32>
      %16 = vector.broadcast %15 : vector<1x1xf32> to vector<1x128xf32>
      %17 = arith.subf %12, %16 : vector<1x128xf32>
      %18 = math.exp %17 : vector<1x128xf32>
      %19 = vector.broadcast %14 : vector<1x1xf32> to vector<1x128xf32>
      %20 = arith.mulf %18, %19 : vector<1x128xf32>
      %c0_9 = arith.constant 0 : index
      %c0_10 = arith.constant 0 : index
      %21 = vector.load %arg6[%c0_9, %c0_10] : memref<1x128xf32, #tpu.memory_space<vmem>>, vector<1x128xf32>
      tpu.vector_store %arg6[%c0_9, %c0_10], %20 {strides = array<i32>} : memref<1x128xf32, #tpu.memory_space<vmem>>, vector<1x128xf32>,
    } else {
    }
    return
  }
  func.func @transform_0(%arg0: i32, %arg1: i32) -> (i32, i32) {
    %c1_i32 = arith.constant 1 : i32
    %0 = arith.subi %c1_i32, %arg0 : i32
    %1 = arith.muli %arg1, %0 : i32
    %c0_i32 = arith.constant 0 : i32
    %2 = arith.muli %c0_i32, %arg0 : i32
    %3 = arith.addi %1, %2 : i32
    %c0_i32_0 = arith.constant 0 : i32
    %c0_i32_1 = arith.constant 0 : i32
    return %3, %c0_i32_0 : i32, i32
  }
  func.func @transform_1(%arg0: i32, %arg1: i32) -> (i32, i32) {
    %c0_i32 = arith.constant 0 : i32
    %c0_i32_0 = arith.constant 0 : i32
    %c0_i32_1 = arith.constant 0 : i32
    return %c0_i32, %c0_i32_0 : i32, i32
  }
  func.func @transform_2(%arg0: i32, %arg1: i32) -> (i32, i32) {
    %c0_i32 = arith.constant 0 : i32
    %c0_i32_0 = arith.constant 0 : i32
    %c0_i32_1 = arith.constant 0 : i32
    return %c0_i32, %c0_i32_0 : i32, i32
  }
  func.func @transform_3(%arg0: i32, %arg1: i32) -> (i32, i32) {
    %c0_i32 = arith.constant 0 : i32
    %c0_i32_0 = arith.constant 0 : i32
    %c0_i32_1 = arith.constant 0 : i32
    return %c0_i32, %c0_i32_0 : i32, i32
  }
  func.func @transform_4(%arg0: i32, %arg1: i32) -> (i32, i32) {
    %0 = arith.muli %arg1, %arg0 : i32
    %c0_i32 = arith.constant 0 : i32
    %c0_i32_0 = arith.constant 0 : i32
    return %c0_i32, %0 : i32, i32
  }
}

</mosaic_0001>

<bundles_post_ra>
// kernel: tpu_custom_call.1
= control target key start
LH: loop header
LB: loop body
LE: loop exit
PB: predicated region body
PF: predicated region fallthrough
CT: control target
= control target key end

     0   :  { %9 = vsyncpa [#allocation6], 0  ;;  %s990_s0 = inlined_call_operand.vmem [shape: f32[8,16], index: 0, kind: input, shape index: {}]   ;;  %s991_s1 = inlined_call_operand.vmem [shape: f32[32,16], index: 1, kind: input, shape index: {}]   ;;  %s992_s2 = inlined_call_operand.vmem [shape: f32[32,1], index: 2, kind: input, shape index: {}]   ;;  %s993_s3 = inlined_call_operand.vmem [shape: f32[32,1], index: 3, kind: input, shape index: {}]   ;;  %s994_s4 = inlined_call_operand.hbm [shape: f32[1,8], index: 4, kind: output, shape index: {}]  }
   0x1   :  { %11 = vsyncpa [#allocation6 + $0x1], 0  ;;  %s794_s15 = smov 0   ;;  %s796_s16 = smov 0  }
   0x2   :  { %s798_s17 = smov 0  }
   0x3 LB: > { %s574_s18 = sadd.s32 4294967295, %s762_s17   ;;  %s575_s19 = sadd.s32 4294967294, %s762_s17   ;;  %s762_s17 = sphi %s798_s17, %s17_s17   ;;  %s758_s16 = sphi %s796_s16, %s996_s16   ;;  %s754_s15 = sphi %s794_s15, %s995_s15  }
   0x4   : > { %s29_s20 = sadd.s32 1, %s758_s16  ;;  %p579_p0 = scmp.ge.s32.totalorder %s762_s17, 1 }
   0x5   : > { %p31_p1 = scmp.ge.s32.totalorder %s29_s20, 2  ;;  %p192_p2 = scmp.lt.s32.totalorder %s762_s17, 3 }
   0x7   : > { %s998_s20 = smov (%p31_p1, %s29_s20), 0  ;;  %p193_p3 = pnand %p579_p0, %p192_p2 }
   0x8   : > { %p236_p4 = scmp.eq.s32.totalorder (!%p193_p3), %s754_s15, 0 }
   0x9   : > { %196 = sbr.rel (%p193_p3) target bundleno = 760 (0x2f8), region = 36 }
   0xe   : > { %241 = sbr.rel (!%p236_p4) target bundleno = 19 (0x13), region = 40  ;;  %vm242_vm0 = vcmask (%p236_p4), 0   ;;  %v764_v0 = vmov (%p236_p4), -1e+30   ;;  %v765_v1 = vmov (%p236_p4), 0.0  }
   0xf   : > { %243 = vst.msk [vmem:[#allocation3] sm:$0x1] (%p236_p4), %vm242_vm0, %v764_v0 }
  0x10   : > { %244 = vst.msk [vmem:[#allocation4] sm:$0x1] (%p236_p4), %vm242_vm0, %v765_v1 }
  0x13 PF: > { %p581_p5 = scmp.ne.s32.totalorder %s754_s15, 0 }
  0x15   : > { %247 = sbr.rel (%p581_p5) target bundleno = 611 (0x263), region = 44 }
  0x1a   : > { %v267_v2 = vld [vmem:[%s990_s0 + $0x78] sm:$0xff]  ;;  %vm292_vm1 = vcmask 130048   ;;  %v266_v3 = vld [vmem:[%s990_s0 + $0x70] sm:$0xff]  ;;  %v265_v4 = vld [vmem:[%s990_s0 + $0x68] sm:$0xff]  ;;  %v766_v9 = vmov 0   ;;  %v424_v59 = vlaneseq  ;;  %vm453_vm3 = vcmask 0  }
  0x1b   : > { %582 = vmatpush.xpose.msk.msra.mxu0 %vm292_vm1, %v267_v2  ;;  %608 = vmatpush.xpose.msk.msra.mxu1 %vm292_vm1, %v267_v2  ;;  %v264_v5 = vld [vmem:[%s990_s0 + $0x60] sm:$0xff]  ;;  %v263_v6 = vld [vmem:[%s990_s0 + $0x58] sm:$0xff]  ;;  %v262_v7 = vld [vmem:[%s990_s0 + $0x50] sm:$0xff] }
  0x1c   : > { %609 = vmatpush.xpose.msk.msra.mxu2 %vm292_vm1, %v267_v2  ;;  %610 = vmatpush.xpose.msk.msra.mxu3 %vm292_vm1, %v267_v2  ;;  %v268_v8 = vld [vmem:[%s992_s2] sm:$0xff]  ;;  %v261_v10 = vld [vmem:[%s990_s0 + $0x48] sm:$0xff]  ;;  %v270_v11 = vld [vmem:[%s992_s2 + $0x10] sm:$0xff]  ;;  %v425_v62 = vand.u32 127, %v424_v59 }
  0x1d   : > { %696 = vset.pattern.permute.xlu0 %v766_v9  ;;  %697 = vset.pattern.permute.xlu1 %v766_v9  ;;  %v260_v12 = vld [vmem:[%s990_s0 + $0x40] sm:$0xff]  ;;  %v269_v13 = vld [vmem:[%s992_s2 + $0x8] sm:$0xff]  ;;  %v259_v14 = vld [vmem:[%s990_s0 + $0x38] sm:$0xff] }
  0x1e   : > { %274 = vperm.xlu0 %696, %v268_v8   ;;  %698 = vset.pattern.permute.xlu2 %v766_v9  ;;  %v271_v15 = vld [vmem:[%s992_s2 + $0x18] sm:$0xff]  ;;  %v388_v16 = vld [vmem:[%s993_s3 + $0x10] sm:$0xff]  ;;  %v386_v17 = vld [vmem:[%s993_s3] sm:$0xff]  ;;  %vm428_vm2 = vcmp.lt.s32.totalorder %v425_v62, 8 }
  0x1f   : > { %583 = vmatpush.xpose.msk.msra.mxu0 %vm292_vm1, %v266_v3  ;;  %611 = vmatpush.xpose.msk.msra.mxu1 %vm292_vm1, %v266_v3  ;;  %v258_v18 = vld [vmem:[%s990_s0 + $0x30] sm:$0xff]  ;;  %v389_v19 = vld [vmem:[%s993_s3 + $0x18] sm:$0xff]  ;;  %v257_v20 = vld [vmem:[%s990_s0 + $0x28] sm:$0xff] }
  0x20   : > { %612 = vmatpush.xpose.msk.msra.mxu2 %vm292_vm1, %v266_v3  ;;  %613 = vmatpush.xpose.msk.msra.mxu3 %vm292_vm1, %v266_v3  ;;  %v387_v21 = vld [vmem:[%s993_s3 + $0x8] sm:$0xff]  ;;  %v256_v22 = vld [vmem:[%s990_s0 + $0x20] sm:$0xff]  ;;  %v255_v23 = vld [vmem:[%s990_s0 + $0x18] sm:$0xff] }
  0x21   : > { %284 = vperm.xlu1 %697, %v270_v11   ;;  %392 = vperm.xlu2 %698, %v386_v17   ;;  %v254_v24 = vld [vmem:[%s990_s0 + $0x10] sm:$0xff]  ;;  %v253_v25 = vld [vmem:[%s990_s0 + $0x8] sm:$0xff]  ;;  %v252_v26 = vld [vmem:[%s990_s0] sm:$0xff] }
  0x22   : > { %v248_v27 = vld [vmem:[%s991_s1] sm:$0xff]  ;;  %v249_v28 = vld [vmem:[%s991_s1 + $0x8] sm:$0xff]  ;;  %v250_v29 = vld [vmem:[%s991_s1 + $0x10] sm:$0xff] }
  0x23   : > { %584 = vmatpush.xpose.msk.msra.mxu0 %vm292_vm1, %v265_v4  ;;  %614 = vmatpush.xpose.msk.msra.mxu1 %vm292_vm1, %v265_v4  ;;  %v251_v30 = vld [vmem:[%s991_s1 + $0x18] sm:$0xff]  ;;  %v434_v3 = vld [vmem:[#allocation3] sm:$0x1] }
  0x24   : > { %615 = vmatpush.xpose.msk.msra.mxu2 %vm292_vm1, %v265_v4  ;;  %616 = vmatpush.xpose.msk.msra.mxu3 %vm292_vm1, %v265_v4 }
  0x26   : > { %279 = vperm.xlu0 %696, %v269_v13  }
  0x27   : > { %585 = vmatpush.xpose.msk.msra.mxu0 %vm292_vm1, %v264_v5  ;;  %617 = vmatpush.xpose.msk.msra.mxu1 %vm292_vm1, %v264_v5 }
  0x28   : > { %618 = vmatpush.xpose.msk.msra.mxu2 %vm292_vm1, %v264_v5  ;;  %619 = vmatpush.xpose.msk.msra.mxu3 %vm292_vm1, %v264_v5 }
  0x29   : > { %289 = vperm.xlu1 %697, %v271_v15   ;;  %397 = vperm.xlu2 %698, %v387_v21  }
  0x2b   : > { %586 = vmatpush.xpose.msk.msra.mxu0 %vm292_vm1, %v263_v6  ;;  %620 = vmatpush.xpose.msk.msra.mxu1 %vm292_vm1, %v263_v6 }
  0x2c   : > { %621 = vmatpush.xpose.msk.msra.mxu2 %vm292_vm1, %v263_v6  ;;  %622 = vmatpush.xpose.msk.msra.mxu3 %vm292_vm1, %v263_v6 }
  0x2e   : > { %402 = vperm.xlu0 %696, %v388_v16  }
  0x2f   : > { %587 = vmatpush.xpose.msk.msra.mxu0 %vm292_vm1, %v262_v7  ;;  %623 = vmatpush.xpose.msk.msra.mxu1 %vm292_vm1, %v262_v7 }
  0x30   : > { %624 = vmatpush.xpose.msk.msra.mxu2 %vm292_vm1, %v262_v7  ;;  %625 = vmatpush.xpose.msk.msra.mxu3 %vm292_vm1, %v262_v7 }
  0x31   : > { %407 = vperm.xlu1 %697, %v389_v19  }
  0x33   : > { %588 = vmatpush.xpose.msk.msra.mxu0 %vm292_vm1, %v261_v10  ;;  %626 = vmatpush.xpose.msk.msra.mxu1 %vm292_vm1, %v261_v10 }
  0x34   : > { %627 = vmatpush.xpose.msk.msra.mxu2 %vm292_vm1, %v261_v10  ;;  %628 = vmatpush.xpose.msk.msra.mxu3 %vm292_vm1, %v261_v10 }
  0x37   : > { %589 = vmatpush.xpose.msk.msra.mxu0 %vm292_vm1, %v260_v12  ;;  %629 = vmatpush.xpose.msk.msra.mxu1 %vm292_vm1, %v260_v12 }
  0x38   : > { %630 = vmatpush.xpose.msk.msra.mxu2 %vm292_vm1, %v260_v12  ;;  %631 = vmatpush.xpose.msk.msra.mxu3 %vm292_vm1, %v260_v12 }
  0x3b   : > { %590 = vmatpush.xpose.msk.msra.mxu0 %vm292_vm1, %v259_v14  ;;  %632 = vmatpush.xpose.msk.msra.mxu1 %vm292_vm1, %v259_v14 }
  0x3c   : > { %633 = vmatpush.xpose.msk.msra.mxu2 %vm292_vm1, %v259_v14  ;;  %634 = vmatpush.xpose.msk.msra.mxu3 %vm292_vm1, %v259_v14  ;;  %v436_v14 = vld [vmem:[#allocation4] sm:$0x1] }
  0x3f   : > { %591 = vmatpush.xpose.msk.msra.mxu0 %vm292_vm1, %v258_v18  ;;  %635 = vmatpush.xpose.msk.msra.mxu1 %vm292_vm1, %v258_v18 }
  0x40   : > { %636 = vmatpush.xpose.msk.msra.mxu2 %vm292_vm1, %v258_v18  ;;  %637 = vmatpush.xpose.msk.msra.mxu3 %vm292_vm1, %v258_v18 }
  0x43   : > { %592 = vmatpush.xpose.msk.msra.mxu0 %vm292_vm1, %v257_v20  ;;  %638 = vmatpush.xpose.msk.msra.mxu1 %vm292_vm1, %v257_v20 }
  0x44   : > { %639 = vmatpush.xpose.msk.msra.mxu2 %vm292_vm1, %v257_v20  ;;  %640 = vmatpush.xpose.msk.msra.mxu3 %vm292_vm1, %v257_v20 }
  0x47   : > { %593 = vmatpush.xpose.msk.msra.mxu0 %vm292_vm1, %v256_v22  ;;  %641 = vmatpush.xpose.msk.msra.mxu1 %vm292_vm1, %v256_v22 }
  0x48   : > { %642 = vmatpush.xpose.msk.msra.mxu2 %vm292_vm1, %v256_v22  ;;  %643 = vmatpush.xpose.msk.msra.mxu3 %vm292_vm1, %v256_v22 }
  0x4b   : > { %594 = vmatpush.xpose.msk.msra.mxu0 %vm292_vm1, %v255_v23  ;;  %644 = vmatpush.xpose.msk.msra.mxu1 %vm292_vm1, %v255_v23 }
  0x4c   : > { %645 = vmatpush.xpose.msk.msra.mxu2 %vm292_vm1, %v255_v23  ;;  %646 = vmatpush.xpose.msk.msra.mxu3 %vm292_vm1, %v255_v23 }
  0x4f   : > { %595 = vmatpush.xpose.msk.msra.mxu0 %vm292_vm1, %v254_v24  ;;  %647 = vmatpush.xpose.msk.msra.mxu1 %vm292_vm1, %v254_v24 }
  0x50   : > { %648 = vmatpush.xpose.msk.msra.mxu2 %vm292_vm1, %v254_v24  ;;  %649 = vmatpush.xpose.msk.msra.mxu3 %vm292_vm1, %v254_v24 }
  0x53   : > { %596 = vmatpush.xpose.msk.msra.mxu0 %vm292_vm1, %v253_v25  ;;  %650 = vmatpush.xpose.msk.msra.mxu1 %vm292_vm1, %v253_v25 }
  0x54   : > { %651 = vmatpush.xpose.msk.msra.mxu2 %vm292_vm1, %v253_v25  ;;  %652 = vmatpush.xpose.msk.msra.mxu3 %vm292_vm1, %v253_v25 }
  0x57   : > { %597 = vmatpush.xpose.msk.msra.mxu0 %vm292_vm1, %v252_v26  ;;  %653 = vmatpush.xpose.msk.msra.mxu1 %vm292_vm1, %v252_v26 }
  0x58   : > { %654 = vmatpush.xpose.msk.msra.mxu2 %vm292_vm1, %v252_v26  ;;  %655 = vmatpush.xpose.msk.msra.mxu3 %vm292_vm1, %v252_v26 }
  0x5a   : > { %598 = vmatmul.msk.f32.vlgmr.msra.gmra.mxu0 %vm292_vm1, %v248_v27  ;;  %599 = vmatmul.msk.f32.vlgmr.msra.gmra.mxu1 %vm292_vm1, %v249_v28 }
  0x5b   : > { %600 = vmatmul.msk.f32.vlgmr.msra.gmra.mxu2 %vm292_vm1, %v250_v29  ;;  %601 = vmatmul.msk.f32.vlgmr.msra.gmra.mxu3 %vm292_vm1, %v251_v30 }
  0x7b   : > { %v393_v33 = vpop.permute.xlu2 %392 }
  0x83   : > { %v398_v42 = vpop.permute.xlu2 %397 }
  0x90   : > { %v275_v31 = vpop.permute.xlu0 %274 }
  0x93   : > { %v285_v32 = vpop.permute.xlu1 %284 }
  0x98   : > { %v280_v34 = vpop.permute.xlu0 %279 }
  0x9b   : > { %v290_v39 = vpop.permute.xlu1 %289 }
  0xa0   : > { %v403_v51 = vpop.permute.xlu0 %402 }
  0xa3   : > { %v408_v54 = vpop.permute.xlu1 %407 }
  0xd7   : > { %v370_v35 = vpop.f32.mrf.mxu0  ;;  %v373_v36 = vpop.f32.mrf.mxu1 }
  0xd8   : > { %v371_v37 = vadd.f32 %v370_v35, %v275_v31  ;;  %v374_v38 = vadd.f32 %v373_v36, %v280_v34 }
  0xda   : > { %v382_v40 = vmax.f32 %v371_v37, 0.0  ;;  %v383_v41 = vmax.f32 %v374_v38, 0.0 }
  0xdc   : > { %v410_v45 = vmul.f32 %v393_v33, %v382_v40  ;;  %v411_v46 = vmul.f32 %v398_v42, %v383_v41 }
  0xde   : > { %v376_v43 = vpop.f32.mrf.mxu2  ;;  %v379_v44 = vpop.f32.mrf.mxu3  ;;  %v414_v52 = vadd.f32 %v411_v46, %v410_v45 }
  0xdf   : > { %v377_v47 = vadd.f32 %v376_v43, %v285_v32  ;;  %v380_v48 = vadd.f32 %v379_v44, %v290_v39 }
  0xe1   : > { %v384_v49 = vmax.f32 %v377_v47, 0.0  ;;  %v385_v50 = vmax.f32 %v380_v48, 0.0 }
  0xe3   : > { %v412_v53 = vmul.f32 %v403_v51, %v384_v49  ;;  %v413_v56 = vmul.f32 %v408_v54, %v385_v50 }
  0xe5   : > { %v415_v55 = vadd.f32 %v414_v52, %v412_v53 }
  0xe7   : > { %v416_v57 = vadd.f32 %v415_v55, %v413_v56 }
  0xe9   : > { %v417_v58 = vrot.slane %v416_v57, 4 }
  0xeb   : > { %v418_v60 = vadd.f32 %v417_v58, %v416_v57 }
  0xed   : > { %v419_v61 = vrot.slane %v418_v60, 2 }
  0xef   : > { %v420_v63 = vadd.f32 %v419_v61, %v418_v60 }
  0xf1   : > { %v421_v0 = vrot.slane %v420_v63, 1 }
  0xf3   : > { %v422_v1 = vadd.f32 %v421_v0, %v420_v63 }
  0xf5   : > { %v429_v2 = vsel %vm428_vm2, %v422_v1, -1e+30 }
  0xf6   : > { %432 = vmax.xlane.f32.xlu2 %v429_v2  ;;  %431 = vst [vmem:[#allocation2] sm:$0x1] %v429_v2 }
 0x169   : > { %v433_v4 = vpop.xlane.xlu2 %432 }
 0x16a   : > { %v435_v5 = vmax.f32 %v434_v3, %v433_v4 }
 0x16c   : > { %v437_v6 = vsub.f32 %v434_v3, %v435_v5  ;;  %455 = vst.msk [vmem:[#allocation3] sm:$0x1] %vm453_vm3, %v435_v5  ;;  %443 = vperm.xlu0 %696, %v435_v5  }
 0x16e   : > { %v438_v12 = vmul.f32 1.442695, %v437_v6 }
 0x1de   : > { %v444_v7 = vpop.permute.xlu0 %443 }
 0x1df   : > { %v446_v8 = vperm.slane %v444_v7, 0 }
 0x1e1   : > { %v447_v9 = vsub.f32 %v429_v2, %v446_v8 }
 0x1e3   : > { %v448_v10 = vmul.f32 1.442695, %v447_v9 }
 0x1e5   : > { %699 = vpow2.f32 %v448_v10 }
 0x1e6   : > { %701 = vpow2.f32 %v438_v12 }
 0x1eb   : > { %v700_v11 = vpop.eup %699 }
 0x1ec   : > { %450 = vadd.xlane.f32.xlu1 %v700_v11  ;;  %v702_v13 = vpop.eup %701 }
 0x1ed   : > { %v440_v15 = vmul.f32 %v702_v13, %v436_v14 }
 0x25f   : > { %v451_v16 = vpop.xlane.xlu1 %450 }
 0x260   : > { %v452_v17 = vadd.f32 %v451_v16, %v440_v15 }
 0x262   : > { %454 = vst.msk [vmem:[#allocation4] sm:$0x1] %vm453_vm3, %v452_v17 }
 0x263 PF: > { %p602_p6 = scmp.ne.s32.totalorder %s754_s15, 1 }
 0x265   : > { %459 = sbr.rel (%p602_p6) target bundleno = 756 (0x2f4), region = 48 }
 0x26a   : > { %v477_v18 = vld [vmem:[#allocation3] sm:$0x1]  ;;  %v462_v19 = vld [vmem:[#allocation4] sm:$0x1]  ;;  %v767_v20 = vmov 0  }
 0x26b   : > { %703 = vset.pattern.permute.xlu0 %v767_v20  ;;  %704 = vrcp.f32 %v462_v19  ;;  %v474_v23 = vand.u32 2147483648, %v462_v19  ;;  %vm468_vm4 = vweird.f32 %v462_v19  ;;  %v472_v25 = vand.u32 2147483647, %v462_v19  ;;  %v461_v32 = vld [vmem:[#allocation2] sm:$0x1] }
 0x26c   : > { %480 = vperm.xlu0 %703, %v477_v18  }
 0x26d   : > { %v475_v27 = vor.u32 1.1754944e-38, %v474_v23  ;;  %vm473_vm7 = vcmp.eq.f32.partialorder %v472_v25, 8.507059e+37 }
 0x271   : > { %v705_v21 = vpop.eup %704 }
 0x272   : > { %v464_v22 = vmul.f32 %v705_v21, %v462_v19  ;;  %vm469_vm5 = vweird.f32 %v705_v21 }
 0x273   : > { %vm470_vm6 = vmor %vm468_vm4, %vm469_vm5 }
 0x274   : > { %v465_v24 = vsub.f32 1.0, %v464_v22 }
 0x276   : > { %v466_v26 = vmul.f32 %v705_v21, %v465_v24 }
 0x278   : > { %v467_v28 = vadd.f32 %v705_v21, %v466_v26 }
 0x27a   : > { %v471_v29 = vsel %vm470_vm6, %v705_v21, %v467_v28 }
 0x27b   : > { %v476_v30 = vsel %vm473_vm7, %v475_v27, %v471_v29 }
 0x27c   : > { %489 = vperm.xlu0 %703, %v476_v30  }
 0x2de   : > { %v481_v31 = vpop.permute.xlu0 %480 }
 0x2df   : > { %v483_v33 = vperm.slane %v481_v31, 0 }
 0x2e1   : > { %v484_v34 = vsub.f32 %v461_v32, %v483_v33 }
 0x2e3   : > { %v485_v35 = vmul.f32 1.442695, %v484_v34 }
 0x2e5   : > { %706 = vpow2.f32 %v485_v35 }
 0x2eb   : > { %v707_v36 = vpop.eup %706 }
 0x2ee   : > { %v490_v37 = vpop.permute.xlu0 %489 }
 0x2ef   : > { %v492_v38 = vperm.slane %v490_v37, 0 }
 0x2f1   : > { %v493_v39 = vmul.f32 %v707_v36, %v492_v38 }
 0x2f3   : > { %494 = vst [vmem:[#allocation5] sm:$0x1] %v493_v39 }
 0x2f4 PF: > { %p664_p7 = scmp.eq.s32.totalorder %s574_s18, 1  ;;  %s509_s12 = sshll.u32 %s994_s4, 4  ;;  %s510_s12 = int_to_ptr.hbm [resolvable:$true] %s509_s12 }
 0x2f5   : > { %s768_s13 = smov [#allocation5]  }
 0x2f6   : > { %s507_s14 = sshll.u32 %s768_s13, 4  ;;  %s508_s14 = int_to_ptr.vmem [resolvable:$true] %s507_s14 }
 0x2f7   : > { %657 = dma.vmem_to_hbm [thread:$0]  (%p664_p7), %s508_s14, 16, %s510_s12, [#allocation6]  }
 0x2f8 PF: > { %p665_p8 = scmp.ge.s32.totalorder %s762_s17, 2  ;;  %p666_p9 = scmp.eq.s32.totalorder %s575_s19, 1 }
 0x2fa   : > { %p661_p10 = pnand %p666_p9, %p665_p8 }
 0x2fc   : > { %p662_p11 = pneg %p661_p10 }
 0x2fe   : > { %749 = dma.done.wait (%p662_p11), [#allocation6], 16  }
 0x2ff   : > { %751 = vsyncadd (%p662_p11), [#allocation6], 4294967280  ;;  %s17_s17 = sadd.s32 1, %s762_s17   ;;  %s995_s15 = smov %s758_s16 }
 0x300   : > { %p14_p12 = scmp.ge.s32.totalorder %s17_s17, 4   ;;  %s996_s16 = smov %s998_s20 }
 0x302   :  { %16 = sbr.rel (!%p14_p12) target bundleno = 3 (0x3), region = 85 }
 0x307   :  { %527 = vsyncpa [#allocation6], 1 }
 0x308   :  { %529 = vsyncpa [#allocation6 + $0x1], 1 }

</bundles_post_ra>
